<compile_context>
chip_gen: v7x
topology: tpu7x:2x2x1
jax: 0.10.0
libtpu: 0.0.40
codegen_flags: <defaults>
</compile_context>

<pallas_src>
import jax
import jax.numpy as jnp
from jax import lax
from jax.experimental import pallas as pl
from jax.experimental.pallas import tpu as pltpu


LANE = 128        # hidden / embed / vocab padded to multiples of this
SUBLANE = 8       # batch padded to multiples of this
TS_MAX = 4        # time steps per recurrence grid block (demo: 4; prod: 8-32)
NEG_INF = -1e30


def _round_up(x, m):
    return ((x + m - 1) // m) * m


def _largest_divisor(n, candidates):
    for c in candidates:
        if c <= n and n % c == 0:
            return c
    return n


def _time_block(L):
    return _largest_divisor(L, tuple(c for c in (32, 16, 8, 4, 2, 1) if c <= TS_MAX))


def _pad_axis(x, axis, target):
    pad = target - x.shape[axis]
    if pad == 0:
        return x
    cfg = [(0, 0)] * x.ndim
    cfg[axis] = (0, pad)
    return jnp.pad(x, cfg)


def _vmem_limit_bytes():
    # Generation-aware VMEM budget: ~3/4 of physical per-core VMEM
    # (v5e/v6e: 96 of 128 MiB, v7x: 48 of 64 MiB), leaving Mosaic headroom.
    try:
        cap = int(pltpu.get_tpu_info().vmem_capacity_bytes)
    except Exception:
        cap = 64 * 1024 * 1024
    return (cap // 4) * 3


_VMEM_LIMIT = _vmem_limit_bytes()


def _cparams(dims):
    return pltpu.CompilerParams(dimension_semantics=dims,
                                vmem_limit_bytes=_VMEM_LIMIT)


# ----------------------------- Pallas kernels -----------------------------

def inproj_kernel(emb_ref, W_ref, b_ref, xp_ref):
    # emb_ref: (Ts, BB, Ep) f32   W_ref: (Ep, 3Hp) bf16   b_ref: (1, 3Hp) f32
    # xp_ref : (Ts, BB, 3Hp) f32
    Ts, BB, Ep = emb_ref.shape
    H3 = xp_ref.shape[-1]
    x2d = emb_ref[...].reshape(Ts * BB, Ep).astype(jnp.bfloat16)
    xp = jnp.dot(x2d, W_ref[...], preferred_element_type=jnp.float32) + b_ref[...]
    xp_ref[...] = xp.reshape(Ts, BB, H3)


def encoder_rnn_kernel(xp_ref, mask_ref, Wh_ref, bh_ref, hid_ref, fin_ref, h_scr):
    # xp_ref : (Ts, BB, 3Hp) f32   mask_ref: (Ts, BB, 1) f32  (1=valid, 0=pad)
    # Wh_ref : (Hp, 3Hp) bf16      bh_ref : (1, 3Hp) f32
    # hid_ref: (Ts, BB, Hp) f32    fin_ref: (BB, Hp) f32      h_scr: (BB, Hp) f32
    Ts, BB, _ = xp_ref.shape
    Hp = h_scr.shape[-1]

    @pl.when(pl.program_id(1) == 0)       # new batch block -> reset hidden
    def _():
        h_scr[...] = jnp.zeros_like(h_scr)

    def step(tt, carry):
        h = h_scr[...]
        xg = xp_ref[tt]                                          # (BB, 3Hp)
        hg = jnp.dot(h.astype(jnp.bfloat16), Wh_ref[...],
                     preferred_element_type=jnp.float32) + bh_ref[...]
        z = jax.nn.sigmoid(xg[:, :Hp] + hg[:, :Hp])
        r = jax.nn.sigmoid(xg[:, Hp:2 * Hp] + hg[:, Hp:2 * Hp])
        n = jnp.tanh(xg[:, 2 * Hp:] + r * hg[:, 2 * Hp:])        # PyTorch GRU gate
        h_new = (1.0 - z) * n + z * h
        m = mask_ref[tt]                                         # (BB, 1)
        h_new = m * h_new + (1.0 - m) * h                        # pack_padded_sequence
        h_scr[...] = h_new
        hid_ref[tt] = m * h_new                                  # pad positions -> 0
        return carry

    lax.fori_loop(0, Ts, step, 0, unroll=True)
    fin_ref[...] = h_scr[...]


def decoder_rnn_kernel(xp_ref, keys_ref, fin_ref, amask_ref, mmask_ref,
                       Wc_ref, Wh_ref, bh_ref, Wb_ref, bb_ref,
                       out_ref, h_scr):
    # xp_ref : (Ts, BB, 3Hp) f32   keys_ref: (BB, S, Hp) f32 (batch-major enc states)
    # fin_ref: (BB, Hp) f32        amask/mmask: (BB, S) f32 (additive / 0-1)
    # Wc/Wh  : (Hp, 3Hp) bf16      bh: (1, 3Hp) f32   Wb: (Hp, Hp) bf16  bb: (1, Hp) f32
    # out_ref: (Ts, BB, Hp) f32    h_scr: (BB, Hp) f32
    Ts, BB, _ = xp_ref.shape
    Hp = h_scr.shape[-1]

    @pl.when(pl.program_id(1) == 0)       # bridge: h0 = tanh(enc_final @ Wb + bb)
    def _():
        h_scr[...] = jnp.tanh(
            jnp.dot(fin_ref[...].astype(jnp.bfloat16), Wb_ref[...],
                    preferred_element_type=jnp.float32) + bb_ref[...])

    # Hoisted loop invariants (small: one/few vregs per batch block).
    amask = amask_ref[...]                 # (BB, S)
    mmask = mmask_ref[...]                 # (BB, S)

    def step(tt, carry):
        h = h_scr[...]                                           # (BB, Hp)
        keys = keys_ref[...]                                     # (BB, S, Hp)
        # Lane-dense masked softmax over S (S on lanes).
        sc = jnp.sum(keys * h[:, None, :], axis=-1) + amask      # (BB, S)
        sc = sc - jnp.max(sc, axis=-1, keepdims=True)
        p = jnp.exp(sc) * mmask
        denom = jnp.sum(p, axis=-1, keepdims=True)               # (BB, 1)
        alphas = p * pl.reciprocal(denom + 1e-30, approx=True)   # eps: no NaN on pad rows
        ctx = jnp.sum(alphas[:, :, None] * keys, axis=1)         # (BB, Hp)
        # TODO(synk): for very long S, do scores/context as MXU batched matmuls
        # ('bqh,bsh->bqs' / 'bqs,bsh->bqh') instead of the VPU/XLU reduce.

        xg = xp_ref[tt] + jnp.dot(ctx.astype(jnp.bfloat16), Wc_ref[...],
                                  preferred_element_type=jnp.float32)
        hg = jnp.dot(h.astype(jnp.bfloat16), Wh_ref[...],
                     preferred_element_type=jnp.float32) + bh_ref[...]
        z = jax.nn.sigmoid(xg[:, :Hp] + hg[:, :Hp])
        r = jax.nn.sigmoid(xg[:, Hp:2 * Hp] + hg[:, Hp:2 * Hp])
        n = jnp.tanh(xg[:, 2 * Hp:] + r * hg[:, 2 * Hp:])
        h_new = (1.0 - z) * n + z * h
        h_scr[...] = h_new
        out_ref[tt] = h_new
        return carry

    lax.fori_loop(0, Ts, step, 0, unroll=True)


def generator_logits_kernel(x_ref, Wg_ref, bg_ref, logits_ref, lse_ref, m_scr, s_scr):
    # x_ref: (tn, Hp) f32  Wg: (Hp, tv) bf16  bg: (1, tv) f32
    # logits_ref: (tn, tv) f32   lse_ref: (tn, 1) f32 (written at last V block)
    # Online logsumexp accumulated across the V grid axis (innermost).
    j = pl.program_id(1)

    @pl.when(j == 0)
    def _():
        m_scr[...] = jnp.full_like(m_scr, -jnp.inf)
        s_scr[...] = jnp.zeros_like(s_scr)

    logits = jnp.dot(x_ref[...].astype(jnp.bfloat16), Wg_ref[...],
                     preferred_element_type=jnp.float32) + bg_ref[...]
    logits_ref[...] = logits

    m_prev = m_scr[...]
    m_new = jnp.maximum(m_prev, jnp.max(logits, axis=-1, keepdims=True))
    s_scr[...] = (s_scr[...] * jnp.exp(m_prev - m_new)
                  + jnp.sum(jnp.exp(logits - m_new), axis=-1, keepdims=True))
    m_scr[...] = m_new

    @pl.when(j == pl.num_programs(1) - 1)
    def _():
        lse_ref[...] = m_scr[...] + jnp.log(s_scr[...])


def logsoftmax_finalize_kernel(logits_ref, lse_ref, out_ref):
    # TODO(synk): emit bf16 log-probs here if downstream tolerates it (halves the
    # largest HBM write); kept f32 for parity with the PyTorch reference.
    out_ref[...] = (logits_ref[...] - lse_ref[...]).astype(out_ref.dtype)


# ------------------------------ wrappers ----------------------------------

def run_inproj(emb_tm, W, b, Hp, bblk, ts):
    L, Bp, Ep = emb_tm.shape
    return pl.pallas_call(
        inproj_kernel,
        out_shape=jax.ShapeDtypeStruct((L, Bp, 3 * Hp), jnp.float32),
        grid=(Bp // bblk, L // ts),
        in_specs=[pl.BlockSpec((ts, bblk, Ep), lambda b_, t: (t, b_, 0)),
                  pl.BlockSpec((Ep, 3 * Hp), lambda b_, t: (0, 0)),
                  pl.BlockSpec((1, 3 * Hp), lambda b_, t: (0, 0))],
        out_specs=pl.BlockSpec((ts, bblk, 3 * Hp), lambda b_, t: (t, b_, 0)),
        compiler_params=_cparams(("parallel", "parallel")),
    )(emb_tm, W, b)


def run_encoder_rnn(xp_tm, len_mask_tm, Wh, bh, Hp, bblk, ts):
    S, Bp, H3 = xp_tm.shape
    return pl.pallas_call(
        encoder_rnn_kernel,
        out_shape=(jax.ShapeDtypeStruct((S, Bp, Hp), jnp.float32),
                   jax.ShapeDtypeStruct((Bp, Hp), jnp.float32)),
        grid=(Bp // bblk, S // ts),
        in_specs=[pl.BlockSpec((ts, bblk, H3), lambda b_, t: (t, b_, 0)),
                  pl.BlockSpec((ts, bblk, 1), lambda b_, t: (t, b_, 0)),
                  pl.BlockSpec((Hp, H3), lambda b_, t: (0, 0)),
                  pl.BlockSpec((1, H3), lambda b_, t: (0, 0))],
        out_specs=(pl.BlockSpec((ts, bblk, Hp), lambda b_, t: (t, b_, 0)),
                   pl.BlockSpec((bblk, Hp), lambda b_, t: (b_, 0))),
        scratch_shapes=[pltpu.VMEM((bblk, Hp), jnp.float32)],
        compiler_params=_cparams(("parallel", "arbitrary")),
    )(xp_tm, len_mask_tm, Wh, bh)


def run_decoder_rnn(xp_tm, keys_bm, enc_final, amask, mmask,
                    Wc, Wh, bh, Wb, bridge_b, Hp, bblk, ts):
    T, Bp, H3 = xp_tm.shape
    S = keys_bm.shape[1]
    return pl.pallas_call(
        decoder_rnn_kernel,
        out_shape=jax.ShapeDtypeStruct((T, Bp, Hp), jnp.float32),
        grid=(Bp // bblk, T // ts),
        in_specs=[pl.BlockSpec((ts, bblk, H3), lambda b_, t: (t, b_, 0)),
                  pl.BlockSpec((bblk, S, Hp), lambda b_, t: (b_, 0, 0)),
                  pl.BlockSpec((bblk, Hp), lambda b_, t: (b_, 0)),
                  pl.BlockSpec((bblk, S), lambda b_, t: (b_, 0)),
                  pl.BlockSpec((bblk, S), lambda b_, t: (b_, 0)),
                  pl.BlockSpec((Hp, H3), lambda b_, t: (0, 0)),
                  pl.BlockSpec((Hp, H3), lambda b_, t: (0, 0)),
                  pl.BlockSpec((1, H3), lambda b_, t: (0, 0)),
                  pl.BlockSpec((Hp, Hp), lambda b_, t: (0, 0)),
                  pl.BlockSpec((1, Hp), lambda b_, t: (0, 0))],
        out_specs=pl.BlockSpec((ts, bblk, Hp), lambda b_, t: (t, b_, 0)),
        scratch_shapes=[pltpu.VMEM((bblk, Hp), jnp.float32)],
        compiler_params=_cparams(("parallel", "arbitrary")),
    )(xp_tm, keys_bm, enc_final, amask, mmask, Wc, Wh, bh, Wb, bridge_b)


def run_generator(x2d, Wg, bg):
    N, Hp = x2d.shape
    Vp = Wg.shape[-1]
    tn = _largest_divisor(N, (256, 128, 64, 32, 16, 8))
    tv = _largest_divisor(Vp, (2048, 1024, 512, 256, 128))
    # Shrink the V tile until double-buffered weight + logits blocks fit a
    # conservative slice of the VMEM budget (halving preserves divisibility).
    while tv > LANE and 2 * (Hp * tv * 2 + tn * tv * 4) > _VMEM_LIMIT // 4:
        tv //= 2
    grid = (N // tn, Vp // tv)

    logits, lse = pl.pallas_call(
        generator_logits_kernel,
        out_shape=(jax.ShapeDtypeStruct((N, Vp), jnp.float32),
                   jax.ShapeDtypeStruct((N, 1), jnp.float32)),
        grid=grid,
        in_specs=[pl.BlockSpec((tn, Hp), lambda i, j: (i, 0)),
                  pl.BlockSpec((Hp, tv), lambda i, j: (0, j)),
                  pl.BlockSpec((1, tv), lambda i, j: (0, j))],
        out_specs=(pl.BlockSpec((tn, tv), lambda i, j: (i, j)),
                   pl.BlockSpec((tn, 1), lambda i, j: (i, 0))),
        scratch_shapes=[pltpu.VMEM((tn, 1), jnp.float32),
                        pltpu.VMEM((tn, 1), jnp.float32)],
        compiler_params=_cparams(("parallel", "arbitrary")),
    )(x2d, Wg, bg)

    return pl.pallas_call(
        logsoftmax_finalize_kernel,
        out_shape=jax.ShapeDtypeStruct((N, Vp), jnp.float32),
        grid=grid,
        in_specs=[pl.BlockSpec((tn, tv), lambda i, j: (i, j)),
                  pl.BlockSpec((tn, 1), lambda i, j: (i, 0))],
        out_specs=pl.BlockSpec((tn, tv), lambda i, j: (i, j)),
        compiler_params=_cparams(("parallel", "parallel")),
    )(logits, lse)


# --------------------------- parameters -----------------------------------

def init_params(key, V_src, V_trg, E, H):
    """Logical (unfused, unpadded) parameters, matching the PyTorch layout."""
    ks = jax.random.split(key, 9)
    nrm = lambda k, shape: (0.1 * jax.random.normal(k, shape)).astype(jnp.float32)
    return dict(
        src_emb=nrm(ks[0], (V_src, E)),
        trg_emb=nrm(ks[1], (V_trg, E)),
        enc_Wi=nrm(ks[2], (3, E, H)),
        enc_Wh=nrm(ks[3], (3, H, H)),
        enc_bi=jnp.zeros((3, 1, H), jnp.float32),
        enc_bh=jnp.zeros((3, 1, H), jnp.float32),
        dec_We=nrm(ks[4], (3, E, H)),
        dec_Wc=nrm(ks[5], (3, H, H)),
        dec_Wh=nrm(ks[6], (3, H, H)),
        dec_bi=jnp.zeros((3, 1, H), jnp.float32),
        dec_bh=jnp.zeros((3, 1, H), jnp.float32),
        bridge_W=nrm(ks[7], (H, H)),
        bridge_b=jnp.zeros((1, H), jnp.float32),
        gen_W=nrm(ks[8], (H, V_trg)),
        gen_b=jnp.zeros((1, V_trg), jnp.float32),
    )


def pack_params(p, E, H, V_trg):
    """Fuse gate matrices along lanes, pad lane-dense, weights to bf16 (MXU)."""
    Ep = _round_up(E, LANE)
    Hp = _round_up(H, LANE)
    Vp = _round_up(V_trg, LANE)

    def fuse_w(W3, rows_p):                     # (3, R, H) -> (rows_p, 3*Hp) bf16
        _, R, C = W3.shape
        Wpad = jnp.pad(W3, ((0, 0), (0, rows_p - R), (0, Hp - C)))
        return jnp.concatenate([Wpad[0], Wpad[1], Wpad[2]], axis=-1).astype(jnp.bfloat16)

    def fuse_b(b3):                             # (3, 1, H) -> (1, 3*Hp) f32
        bpad = jnp.pad(b3, ((0, 0), (0, 0), (0, Hp - b3.shape[-1])))
        return jnp.concatenate([bpad[0], bpad[1], bpad[2]], axis=-1)

    gen_b = p['gen_b']
    if Vp > V_trg:                              # padded vocab cols vanish from softmax
        gen_b = jnp.concatenate(
            [gen_b, jnp.full((1, Vp - V_trg), NEG_INF, jnp.float32)], axis=-1)

    return dict(
        E=E, Ep=Ep, H=H, Hp=Hp, V_trg=V_trg, Vp=Vp,
        src_emb=jnp.pad(p['src_emb'], ((0, 0), (0, Ep - E))),
        trg_emb=jnp.pad(p['trg_emb'], ((0, 0), (0, Ep - E))),
        enc_Wi=fuse_w(p['enc_Wi'], Ep),
        enc_Wh=fuse_w(p['enc_Wh'], Hp),
        enc_bi=fuse_b(p['enc_bi']),
        enc_bh=fuse_b(p['enc_bh']),
        dec_We=fuse_w(p['dec_We'], Ep),
        dec_Wc=fuse_w(p['dec_Wc'], Hp),
        dec_Wh=fuse_w(p['dec_Wh'], Hp),
        dec_bi=fuse_b(p['dec_bi']),
        dec_bh=fuse_b(p['dec_bh']),
        bridge_W=jnp.pad(p['bridge_W'], ((0, Hp - H), (0, Hp - H))).astype(jnp.bfloat16),
        bridge_b=jnp.pad(p['bridge_b'], ((0, 0), (0, Hp - H))),
        gen_W=jnp.pad(p['gen_W'], ((0, Hp - H), (0, Vp - V_trg))).astype(jnp.bfloat16),
        gen_b=gen_b,
    )


# --------------------------- forward pass ----------------------------------

def encoder_decoder_forward(pp, src, trg, src_mask, trg_mask,
                            src_lengths, trg_lengths):
    """EncoderDecoder.forward: encode(src_embed(src)) then decode(trg_embed(trg)),
    plus the generator (Linear + log_softmax) on the decoder states."""
    B, S = src.shape
    _, T = trg.shape
    H, Hp = pp['H'], pp['Hp']
    V, Vp = pp['V_trg'], pp['Vp']
    Bp = _round_up(B, SUBLANE)
    bblk = _largest_divisor(Bp, (32, 16, 8))
    ts_s, ts_t = _time_block(S), _time_block(T)

    # Pad batch once (pad rows get token 0, length 0, mask 0).
    src_p = _pad_axis(src, 0, Bp)
    trg_p = _pad_axis(trg, 0, Bp)
    src_len_p = _pad_axis(src_lengths, 0, Bp)
    src_mask_p = _pad_axis(src_mask.astype(jnp.float32), 0, Bp)         # (Bp, S)

    # Embedding gather directly in time-major (XLA side).
    src_e_tm = jnp.take(pp['src_emb'], jnp.transpose(src_p), axis=0)    # (S,Bp,Ep)
    trg_e_tm = jnp.take(pp['trg_emb'], jnp.transpose(trg_p), axis=0)    # (T,Bp,Ep)

    # Recurrence length mask (pack_padded_sequence equivalent), time-major.
    len_mask_tm = (jnp.arange(S)[:, None] < src_len_p[None, :]
                   ).astype(jnp.float32)[:, :, None]                    # (S,Bp,1)

    # Attention masks, batch-major lane-dense: additive + multiplicative.
    mmask = src_mask_p                                                   # (Bp,S)
    amask = (1.0 - mmask) * NEG_INF                                      # (Bp,S)

    # 1) fused GRU input projections (gridded MXU matmuls).
    enc_xp = run_inproj(src_e_tm, pp['enc_Wi'], pp['enc_bi'], Hp, bblk, ts_s)
    dec_xp = run_inproj(trg_e_tm, pp['dec_We'], pp['dec_bi'], Hp, bblk, ts_t)

    # 2) encoder recurrence (grid over batch x time, hidden carried in scratch).
    enc_hid_tm, enc_final = run_encoder_rnn(enc_xp, len_mask_tm,
                                            pp['enc_Wh'], pp['enc_bh'],
                                            Hp, bblk, ts_s)

    # 3) decoder recurrence with masked dot-product attention over enc states.
    keys_bm = jnp.transpose(enc_hid_tm, (1, 0, 2))                       # (Bp,S,Hp)
    dec_tm = run_decoder_rnn(dec_xp, keys_bm, enc_final, amask, mmask,
                             pp['dec_Wc'], pp['dec_Wh'], pp['dec_bh'],
                             pp['bridge_W'], pp['bridge_b'], Hp, bblk, ts_t)

    # 4) generator: vocab-tiled matmul + online logsumexp + finalize.
    logp = run_generator(dec_tm.reshape(T * Bp, Hp), pp['gen_W'], pp['gen_b'])
    logp_tm = logp.reshape(T, Bp, Vp)

    # Interface glue: slice away padding, return batch-first like PyTorch.
    dec_out = jnp.transpose(dec_tm[:, :B, :H], (1, 0, 2))                # (B,T,H)
    enc_hid = jnp.transpose(enc_hid_tm[:, :B, :H], (1, 0, 2))            # (B,S,H)
    enc_final_out = enc_final[:B, :H]                                    # (B,H)
    log_probs = jnp.transpose(logp_tm[:, :B, :V], (1, 0, 2))             # (B,T,V)

    # TODO(synk): trg_mask / trg_lengths only affect loss masking in the
    # reference model (not decode compute); accepted but unused.
    return dec_out, enc_hid, enc_final_out, log_probs


if __name__ == "__main__":
    B, S, T, E, H = 2, 8, 8, 32, 32
    V_SRC, V_TRG = 64, 128

    key = jax.random.PRNGKey(0)
    kp, ks, kt = jax.random.split(key, 3)
    params = init_params(kp, V_SRC, V_TRG, E, H)
    packed = pack_params(params, E=E, H=H, V_trg=V_TRG)

    src = jax.random.randint(ks, (B, S), 1, V_SRC, dtype=jnp.int32)
    trg = jax.random.randint(kt, (B, T), 1, V_TRG, dtype=jnp.int32)
    src_lengths = jnp.array([8, 5], jnp.int32)
    trg_lengths = jnp.array([8, 6], jnp.int32)
    src_mask = jnp.arange(S)[None, :] < src_lengths[:, None]   # (B, S) bool
    trg_mask = jnp.arange(T)[None, :] < trg_lengths[:, None]   # (B, T) bool

    dec_out, enc_hid, enc_final, log_probs = encoder_decoder_forward(
        packed, src, trg, src_mask, trg_mask, src_lengths, trg_lengths)

    jax.block_until_ready((dec_out, enc_hid, enc_final, log_probs))
    print("KERNEL_OK")
</pallas_src>

<mosaic_0001>
module attributes {stable_mosaic.version = 11 : i64} {
  func.func @inproj_kernel(%arg0: i32, %arg1: i32, %arg2: memref<4x8x128xf32, #tpu.memory_space<vmem>>, %arg3: memref<128x384xbf16, #tpu.memory_space<vmem>>, %arg4: memref<1x384xf32, #tpu.memory_space<vmem>>, %arg5: memref<4x8x384xf32, #tpu.memory_space<vmem>>) attributes {dimension_semantics = [#tpu.dimension_semantics<parallel>, #tpu.dimension_semantics<parallel>], iteration_bounds = array<i64: 1, 2>, scalar_prefetch = 0 : i64, scratch_operands = 0 : i64, tpu.core_type = #tpu.core_type<tc>, window_params = [{transform_indices = @transform_0, window_bounds = array<i64: 4, 8, 128>}, {pipeline_mode = #tpu.pipeline_mode<synchronous>, transform_indices = @transform_1, window_bounds = array<i64: 128, 384>}, {pipeline_mode = #tpu.pipeline_mode<synchronous>, transform_indices = @transform_2, window_bounds = array<i64: 1, 384>}, {transform_indices = @transform_3, window_bounds = array<i64: 4, 8, 384>}]} {
    %c0 = arith.constant 0 : index
    %c0_0 = arith.constant 0 : index
    %c0_1 = arith.constant 0 : index
    %0 = vector.load %arg2[%c0, %c0_0, %c0_1] : memref<4x8x128xf32, #tpu.memory_space<vmem>>, vector<4x8x128xf32>
    %1 = vector.shape_cast %0 : vector<4x8x128xf32> to vector<32x128xf32>
    %2 = arith.truncf %1 : vector<32x128xf32> to vector<32x128xbf16>
    %c0_2 = arith.constant 0 : index
    %c0_3 = arith.constant 0 : index
    %3 = vector.load %arg3[%c0_2, %c0_3] : memref<128x384xbf16, #tpu.memory_space<vmem>>, vector<128x384xbf16>
    %cst = arith.constant dense<0.000000e+00> : vector<32x384xf32>
    %4 = tpu.matmul %2, %3, %cst {dimension_numbers = #tpu.dot_dimension_numbers<[1], [0], [0], [1], [0, 0, 1, 1], [], []>} : vector<32x128xbf16>, vector<128x384xbf16>, vector<32x384xf32> -> vector<32x384xf32>
    %c0_4 = arith.constant 0 : index
    %c0_5 = arith.constant 0 : index
    %5 = vector.load %arg4[%c0_4, %c0_5] : memref<1x384xf32, #tpu.memory_space<vmem>>, vector<1x384xf32>
    %6 = vector.broadcast %5 : vector<1x384xf32> to vector<32x384xf32>
    %7 = arith.addf %4, %6 : vector<32x384xf32>
    %8 = vector.shape_cast %7 : vector<32x384xf32> to vector<4x8x384xf32>
    %c0_6 = arith.constant 0 : index
    %c0_7 = arith.constant 0 : index
    %c0_8 = arith.constant 0 : index
    %9 = vector.load %arg5[%c0_6, %c0_7, %c0_8] : memref<4x8x384xf32, #tpu.memory_space<vmem>>, vector<4x8x384xf32>
    tpu.vector_store %arg5[%c0_6, %c0_7, %c0_8], %8 {strides = array<i32>} : memref<4x8x384xf32, #tpu.memory_space<vmem>>, vector<4x8x384xf32>,
    return
  }
  func.func @transform_0(%arg0: i32, %arg1: i32) -> (i32, i32, i32) {
    %c0_i32 = arith.constant 0 : i32
    %c0_i32_0 = arith.constant 0 : i32
    return %arg1, %arg0, %c0_i32 : i32, i32, i32
  }
  func.func @transform_1(%arg0: i32, %arg1: i32) -> (i32, i32) {
    %c0_i32 = arith.constant 0 : i32
    %c0_i32_0 = arith.constant 0 : i32
    %c0_i32_1 = arith.constant 0 : i32
    return %c0_i32, %c0_i32_0 : i32, i32
  }
  func.func @transform_2(%arg0: i32, %arg1: i32) -> (i32, i32) {
    %c0_i32 = arith.constant 0 : i32
    %c0_i32_0 = arith.constant 0 : i32
    %c0_i32_1 = arith.constant 0 : i32
    return %c0_i32, %c0_i32_0 : i32, i32
  }
  func.func @transform_3(%arg0: i32, %arg1: i32) -> (i32, i32, i32) {
    %c0_i32 = arith.constant 0 : i32
    %c0_i32_0 = arith.constant 0 : i32
    return %arg1, %arg0, %c0_i32 : i32, i32, i32
  }
}

</mosaic_0001>

<bundles_post_ra>
// kernel: tpu_custom_call.1
= control target key start
LH: loop header
LB: loop body
LE: loop exit
PB: predicated region body
PF: predicated region fallthrough
CT: control target
= control target key end

     0   :  { %8 = vsyncpa [#allocation3], 0  ;;  %s1241_s0 = inlined_call_operand.hbm [shape: f32[8,8,128], index: 0, kind: input, shape index: {}]   ;;  %s1242_s1 = inlined_call_operand.hbm [shape: bf16[128,384], index: 1, kind: input, shape index: {}]   ;;  %s1243_s2 = inlined_call_operand.vmem [shape: f32[1,384], index: 2, kind: input, shape index: {}]   ;;  %s1244_s3 = inlined_call_operand.hbm [shape: f32[8,8,384], index: 3, kind: output, shape index: {}]  }
   0x1   :  { %10 = vsyncpa [#allocation3 + $0x1], 0 }
   0x2   :  { %11 = vsyncpa [#allocation6], 0 }
   0x3   :  { %12 = vsyncpa [#allocation4], 0 }
   0x4   :  { %14 = vsyncpa [#allocation4 + $0x1], 0  ;;  %s995_s12 = smov 0   ;;  %s997_s13 = smov 0  }
   0x5   :  { %s999_s14 = smov 0   ;;  %s1001_s15 = smov 0  }
   0x6   :  { %s1003_s16 = smov 0   ;;  %s1005_s17 = smov 0  }
   0x7 LB: > { %s634_s18 = sadd.s32 4294967295, %s963_s17   ;;  %s635_s19 = sadd.s32 4294967294, %s963_s17   ;;  %s963_s17 = sphi %s1005_s17, %s20_s17   ;;  %s959_s16 = sphi %s1003_s16, %s1268_s16   ;;  %s955_s15 = sphi %s1001_s15, %s1267_s15   ;;  %s951_s14 = sphi %s999_s14, %s1266_s14   ;;  %s947_s13 = sphi %s997_s13, %s1265_s13   ;;  %s943_s12 = sphi %s995_s12, %s1264_s12  }
   0x8   : > { %p54_p0 = scmp.ne.s32.totalorder %s947_s13, %s943_s12  ;;  %p1029_p1 = scmp.eq.s32.totalorder %s634_s18, 0 }
   0x9   : > { %p1033_p2 = scmp.eq.s32.totalorder %s634_s18, 1  ;;  %p128_p3 = scmp.eq.s32.totalorder %s635_s19, 1 }
   0xa   : > { %s1249_s20 = scalar_select %p1029_p1, 1, 0 }
   0xb   : > { %s1250_s21 = scalar_select %p1033_p2, 1, 0 }
   0xc   : > { %p1039_p4 = por %p1029_p1, %p54_p0  ;;  %p636_p5 = scmp.ge.s32.totalorder %s963_s17, 1 }
   0xd   : > { %p1044_p6 = por %p128_p3, %p54_p0  ;;  %p135_p7 = scmp.lt.s32.totalorder %s963_s17, 3 }
   0xe   : > { %s1251_s22 = scalar_select %p1039_p4, 1, 0 }
   0xf   : > { %s1252_s23 = scalar_select %p1044_p6, 1, 0 }
  0x10   : > { %p1049_p8 = pnand %p636_p5, %p135_p7  ;;  %s965_s25 = smov [#allocation5]  }
  0x11   : > { %s147_s26 = sshll.u32 %s965_s25, 4  ;;  %s29_s28 = sadd.s32 1, %s959_s16  ;;  %s148_s26 = int_to_ptr.vmem [resolvable:$true] %s147_s26 }
  0x12   : > { %s1253_s24 = scalar_select %p1049_p8, 1, 0 }
  0x13   : > { %p715_p9 = pneg %p1049_p8  ;;  %s819_s4 = scalar_lea.hbm %s1242_s1, 3072 }
  0x14   : > { %p820_p12 = scmp.ne.s32.totalorder %s1242_s1, %s819_s4  ;;  %p826_p5 = scmp.lt.u32.totalorder %s819_s4, %s1242_s1 }
  0x15   : > { %p1058_p11 = pnand %p715_p9, %p1029_p1 }
  0x17   : > { %p821_p13 = pneg %p1058_p11 }
  0x19   : > { %p822_p0 = pnand %p821_p13, %p820_p12 }
  0x1b   : > { %p823_p3 = pneg %p822_p0 }
  0x1d   : > { %p828_p7 = pnand %p826_p5, %p823_p3 }
  0x1f   : > { %831 = shalt.err (!%p828_p7)
}
  0x20   : > { %s832_s9 = scalar_lea.vmem %s148_s26, 3072  ;;  %p840_p1 = scmp.lt.s32.totalorder %s148_s26, %s148_s26 }
  0x21   : > { %p833_p9 = scmp.ne.s32.totalorder %s148_s26, %s832_s9  ;;  %p841_p4 = scmp.lt.s32.totalorder %s832_s9, %s832_s9 }
  0x23   : > { %p835_p10 = pnand %p833_p9, %p821_p13  ;;  %p842_p8 = por %p841_p4, %p840_p1 }
  0x25   : > { %p836_p6 = pneg %p835_p10 }
  0x27   : > { %p843_p2 = pnand %p842_p8, %p836_p6 }
  0x29   : > { %846 = shalt.err (!%p843_p2)
}
  0x2a   : > { %s966_s10 = smov 192   ;;  %s967_s11 = smov 12  }
  0x2b   : > { %718 = dma.hbm_to_vmem [thread:$0]  (!%p1058_p11), %s1242_s1, 3072, %s148_s26, [#allocation6], %s966_s10, %s966_s10, %s967_s11  }
  0x2c   : > { %p30_p1 = scmp.ge.s32.totalorder %s29_s28, 2  ;;  %s41_s25 = sadd.s32 1, %s951_s14 }
  0x2d   : > { %p48_p2 = scmp.ne.s32.totalorder %s951_s14, %s947_s13  ;;  %p49_p4 = scmp.eq.s32.totalorder %s963_s17, 0 }
  0x2e   : > { %s1270_s28 = smov (%p30_p1, %s29_s28), 0  ;;  %p1256_p8 = scmp.ne.s32.totalorder %s1250_s21, 0 }
  0x2f   : > { %p1085_p6 = por %p49_p4, %p48_p2  ;;  %s36_s27 = ssub.s32 %s959_s16, %s1270_s28 }
  0x30   : > { %p1091_p10 = por %p1256_p8, %p48_p2  ;;  %p728_p12 = scmp.lt.s32.totalorder %s963_s17, 2 }
  0x31   : > { %p39_p11 = scmp.eq.s32.totalorder %s36_s27, 0  ;;  %s164_s26 = sand.u32 1, %s951_s14  }
  0x32   : > { %s639_s4 = sshll.u32 %s164_s26, 5  ;;  %s674_s6 = sshll.u32 %s959_s16, 9 }
  0x33   : > { %s1100_s5 = scalar_select %p39_p11, %s951_s14, %s41_s25  }
  0x34   : > { %s1106_s9 = scalar_lea.hbm %s1241_s0, %s674_s6  ;;  %s168_s21 = scalar_lea.vmem [#allocation2], %s639_s4 }
  0x35   : > { %s176_s10 = sshll.u32 %s168_s21, 4  ;;  %p1112_p13 = pnand %p728_p12, %p1085_p6  ;;  %s1108_s10 = int_to_ptr.vmem [resolvable:$true] %s176_s10 }
  0x36   : > { %s1116_s18 = scalar_lea.sflag [#allocation3], %s164_s26  ;;  %s847_s19 = scalar_lea.hbm %s1106_s9, 512 }
  0x37   : > { %p848_p0 = scmp.ne.s32.totalorder %s1106_s9, %s847_s19  ;;  %p849_p3 = pneg %p1112_p13 }
  0x38   : > { %s852_s29 = scalar_lea.hbm %s1241_s0, 1024  ;;  %p853_p9 = scmp.lt.u32.totalorder %s1106_s9, %s1241_s0 }
  0x39   : > { %p850_p5 = pnand %p849_p3, %p848_p0  ;;  %p854_p1 = scmp.lt.u32.totalorder %s852_s29, %s847_s19 }
  0x3a   : > { %p856_p4 = scmp.lt.u32.totalorder %s847_s19, %s1106_s9 }
  0x3b   : > { %p851_p7 = pneg %p850_p5  ;;  %p855_p2 = por %p854_p1, %p853_p9 }
  0x3d   : > { %p857_p6 = por %p856_p4, %p855_p2 }
  0x3f   : > { %p858_p8 = pnand %p857_p6, %p851_p7 }
  0x41   : > { %861 = shalt.err (!%p858_p8)
}
  0x42   : > { %s862_s26 = scalar_lea.vmem %s1108_s10, 512  ;;  %s968_s7 = smov [#allocation2]  }
  0x43   : > { %p863_p12 = scmp.ne.s32.totalorder %s1108_s10, %s862_s26  ;;  %s867_s8 = sshll.u32 %s968_s7, 4  ;;  %s868_s8 = int_to_ptr.vmem [resolvable:$false] %s867_s8 }
  0x44   : > { %s869_s21 = scalar_lea.vmem %s868_s8, 1024  ;;  %p870_p5 = scmp.lt.s32.totalorder %s1108_s10, %s868_s8 }
  0x45   : > { %p865_p11 = pnand %p863_p12, %p849_p3  ;;  %p871_p9 = scmp.lt.s32.totalorder %s869_s21, %s862_s26 }
  0x47   : > { %p866_p0 = pneg %p865_p11  ;;  %p872_p1 = por %p871_p9, %p870_p5 }
  0x49   : > { %p873_p2 = pnand %p872_p1, %p866_p0 }
  0x4b   : > { %876 = shalt.err (!%p873_p2)
}
  0x4c   : > { %s969_s19 = smov 128   ;;  %s970_s25 = smov 8  }
  0x4d   : > { %722 = dma.hbm_to_vmem [thread:$0]  (!%p1112_p13), %s1106_s9, 512, %s1108_s10, %s1116_s18, %s969_s19, %s969_s19, %s970_s25  }
  0x4e   : > { %p1259_p3 = scmp.ne.s32.totalorder %s1253_s24, 0 }
  0x4f   : > { %s1147_s27 = sand.u32 (!%p1259_p3), 1, %s947_s13   ;;  %p1260_p7 = scmp.ne.s32.totalorder (!%p1259_p3), %s1251_s22, 0 }
  0x50   : > { %188 = sbr.rel (%p1259_p3) target bundleno = 364 (0x16c), region = 32  ;;  %s643_s29 = sshll.u32 (!%p1259_p3), %s1147_s27, 5 }
  0x51   : > { %s191_s4 = scalar_lea.sflag (!%p1259_p3), [#allocation3], %s1147_s27  ;;  %s1151_s6 = scalar_lea.vmem (!%p1259_p3), [#allocation2], %s643_s29 }
  0x57   : > { %930 = dma.done.wait (%p1260_p7), %s191_s4, 512  }
  0x58   : > { %932 = vsyncadd (%p1260_p7), %s191_s4, 4294966784  ;;  %p1261_p13 = scmp.ne.s32.totalorder %s1249_s20, 0 }
  0x5a   : > { %934 = dma.done.wait (%p1261_p13), [#allocation6], 3072  }
  0x5b   : > { %936 = vsyncadd (%p1261_p13), [#allocation6], 4294964224  ;;  %v971_v0 = vmov 0   ;;  %v787_v1 = vld [vmem:[#allocation5 + $0x4] ss:$12 sps:$4 sm:$0xff]   ;;  %v225_v18 = vld [vmem:[%s1151_s6 + $0x8] sm:$0xff]  ;;  %v264_v31 = vlaneseq }
  0x5c   : > { %439 = vmatprep.mubr.bf16.mxu0 %v971_v0  ;;  %v789_v2 = vld [vmem:[#allocation5] ss:$12 sps:$4 sm:$0xff]   ;;  %407 = vmatprep.subr.bf16.mxu0 %v787_v1  ;;  %v790_v3 = vld [vmem:[#allocation5 + $0x1c] ss:$12 sps:$4 sm:$0xff]   ;;  %v792_v4 = vld [vmem:[#allocation5 + $0x18] ss:$12 sps:$4 sm:$0xff]  }
  0x5d   : > { %408 = vmatpush1.bf16.msra.mxu0 %v789_v2  ;;  %v793_v5 = vld [vmem:[#allocation5 + $0x8] ss:$12 sps:$4 sm:$0xff]   ;;  %v797_v7 = vld [vmem:[#allocation5 + $0x20] ss:$12 sps:$4 sm:$0xff]   ;;  %v796_v8 = vld [vmem:[#allocation5 + $0x30] ss:$12 sps:$4 sm:$0xff]  }
  0x5e   : > { %409 = vmatprep.subr.bf16.mxu0 %v790_v3  ;;  %v794_v6 = vld [vmem:[#allocation5 + $0x34] ss:$12 sps:$4 sm:$0xff]   ;;  %685 = vmatprep.subr.bf16.mxu1 %v793_v5  ;;  %v798_v9 = vld [vmem:[#allocation5 + $0x4c] ss:$12 sps:$4 sm:$0xff]   ;;  %v805_v12 = vld [vmem:[#allocation5 + $0x50] ss:$12 sps:$4 sm:$0xff]  }
  0x5f   : > { %686 = vmatpush3.bf16.msra.mxu1 %v793_v5  ;;  %v801_v10 = vld [vmem:[#allocation5 + $0x38] ss:$12 sps:$4 sm:$0xff]   ;;  %v800_v11 = vld [vmem:[#allocation5 + $0x48] ss:$12 sps:$4 sm:$0xff]   ;;  %v804_v14 = vld [vmem:[#allocation5 + $0x60] ss:$12 sps:$4 sm:$0xff]  }
  0x60   : > { %687 = vmatprep.subr.bf16.mxu1 %v797_v7  ;;  %v802_v13 = vld [vmem:[#allocation5 + $0x64] ss:$12 sps:$4 sm:$0xff]   ;;  %v809_v15 = vld [vmem:[#allocation5 + $0x68] ss:$12 sps:$4 sm:$0xff]   ;;  %v813_v20 = vld [vmem:[#allocation5 + $0x80] ss:$12 sps:$4 sm:$0xff]  }
  0x61   : > { %410 = vmatpush1.bf16.msra.mxu0 %v792_v4  ;;  %v806_v16 = vld [vmem:[#allocation5 + $0x7c] ss:$12 sps:$4 sm:$0xff]   ;;  %v224_v17 = vld [vmem:[%s1151_s6] sm:$0xff]  ;;  %v814_v25 = vld [vmem:[#allocation5 + $0xac] ss:$12 sps:$4 sm:$0xff]   ;;  %v265_v32 = vshrl.u32 %v264_v31, 7 }
  0x62   : > { %411 = vmatprep.subr.bf16.mxu0 %v794_v6  ;;  %v808_v19 = vld [vmem:[#allocation5 + $0x78] ss:$12 sps:$4 sm:$0xff]   ;;  %v228_v21 = vpack.c.bf16 %v225_v18, %v224_v17  ;;  %v810_v22 = vld [vmem:[#allocation5 + $0x94] ss:$12 sps:$4 sm:$0xff]   ;;  %v812_v23 = vld [vmem:[#allocation5 + $0x90] ss:$12 sps:$4 sm:$0xff]  }
  0x63   : > { %688 = vmatpush3.bf16.msra.mxu1 %v797_v7  ;;  %v817_v24 = vld [vmem:[#allocation5 + $0x98] ss:$12 sps:$4 sm:$0xff]   ;;  %v816_v26 = vld [vmem:[#allocation5 + $0xa8] ss:$12 sps:$4 sm:$0xff]   ;;  %v818_v27 = vld [vmem:[#allocation5 + $0xb0] ss:$12 sps:$4 sm:$0xff]  }
  0x64   : > { %689 = vmatprep.subr.bf16.mxu1 %v801_v10  ;;  %701 = vmatprep.mubr.bf16.mxu1 %v228_v21  ;;  %v226_v28 = vld [vmem:[%s1151_s6 + $0x10] sm:$0xff]  ;;  %v227_v29 = vld [vmem:[%s1151_s6 + $0x18] sm:$0xff]  ;;  %v266_v33 = vsub.s32 0, %v265_v32  ;;  %v262_v34 = vld [vmem:[%s1243_s2] sm:$0x7]  ;;  %v270_v35 = vsub.s32 1, %v265_v32 }
  0x65   : > { %412 = vmatpush1.bf16.msra.mxu0 %v796_v8  ;;  %v229_v30 = vpack.c.bf16 %v227_v29, %v226_v28  ;;  %s705_s24 = smul.u32 96, %s1147_s27  ;;  %v274_v36 = vsub.s32 2, %v265_v32  ;;  %s972_s21 = smov [#allocation7]  }
  0x66   : > { %413 = vmatprep.subr.bf16.mxu0 %v798_v9  ;;  %v267_v37 = vrot.slane %v262_v34, %v266_v33  ;;  %v271_v38 = vrot.slane %v262_v34, %v270_v35  ;;  %s706_s10 = smul.u32 1536, %s955_s15  ;;  %s522_s15 = scalar_lea.sflag [#allocation4], %s1147_s27 }
  0x67   : > { %690 = vmatpush3.bf16.msra.mxu1 %v801_v10  ;;  %v275_v40 = vrot.slane %v262_v34, %v274_v36  ;;  %s1171_s9 = scalar_lea.vmem [#allocation7], %s705_s24  ;;  %s881_s19 = sshll.u32 %s972_s21, 4  ;;  %s882_s19 = int_to_ptr.vmem [resolvable:$false] %s881_s19 }
  0x68   : > { %691 = vmatprep.subr.bf16.mxu1 %v805_v12  ;;  %s538_s11 = sshll.u32 %s1171_s9, 4  ;;  %s1187_s7 = scalar_lea.hbm %s1244_s3, %s706_s10  ;;  %s1189_s11 = int_to_ptr.vmem [resolvable:$true] %s538_s11 }
  0x69   : > { %414 = vmatpush1.bf16.msra.mxu0 %v800_v11  ;;  %s877_s8 = scalar_lea.vmem %s1189_s11, 1536  ;;  %s883_s25 = scalar_lea.vmem %s882_s19, 3072 }
  0x6a   : > { %415 = vmatprep.subr.bf16.mxu0 %v802_v13  ;;  %p878_p4 = scmp.ne.s32.totalorder %s1189_s11, %s877_s8  ;;  %p884_p12 = scmp.lt.s32.totalorder %s1189_s11, %s882_s19 }
  0x6b   : > { %692 = vmatpush3.bf16.msra.mxu1 %v805_v12  ;;  %p885_p11 = scmp.lt.s32.totalorder %s883_s25, %s877_s8 }
  0x6c   : > { %693 = vmatprep.subr.bf16.mxu1 %v809_v15  ;;  %p879_p6 = pnand %p878_p4, %p1091_p10 }
  0x6d   : > { %416 = vmatpush1.bf16.msra.mxu0 %v804_v14  ;;  %p886_p0 = por %p885_p11, %p884_p12 }
  0x6e   : > { %417 = vmatprep.subr.bf16.mxu0 %v806_v16  ;;  %p880_p8 = pneg %p879_p6 }
  0x6f   : > { %694 = vmatpush3.bf16.msra.mxu1 %v809_v15 }
  0x70   : > { %695 = vmatprep.subr.bf16.mxu1 %v813_v20  ;;  %p887_p5 = pnand %p886_p0, %p880_p8 }
  0x71   : > { %418 = vmatpush1.bf16.msra.mxu0 %v808_v19 }
  0x72   : > { %419 = vmatprep.subr.bf16.mxu0 %v810_v22 }
  0x73   : > { %696 = vmatpush3.bf16.msra.mxu1 %v813_v20 }
  0x74   : > { %697 = vmatprep.subr.bf16.mxu1 %v817_v24 }
  0x75   : > { %420 = vmatpush1.bf16.msra.mxu0 %v812_v23 }
  0x76   : > { %421 = vmatprep.subr.bf16.mxu0 %v814_v25 }
  0x77   : > { %698 = vmatpush3.bf16.msra.mxu1 %v817_v24 }
  0x78   : > { %699 = vmatprep.subr.bf16.mxu1 %v818_v27 }
  0x79   : > { %422 = vmatpush1.bf16.msra.mxu0 %v816_v26 }
  0x7b   : > { %700 = vmatpush3.bf16.msra.mxu1 %v818_v27 }
  0x7c   : > { %440 = vmatmul.mubr.bf16.vlgmr.msra.gmra.mrb[0].mxu0 %v228_v21 }
  0x7d   : > { %449 = vmatprep.mubr.bf16.mxu0 %v971_v0 }
  0x7e   : > { %702 = vmatmul.mubr.bf16.vlgmr.msra.gmra.mrb[0].mxu1 %v229_v30 }
  0x84   : > { %450 = vmatmul.mubr.bf16.gmra.mrb[4].mxu0 %v229_v30 }
 0x14f   : > { %v441_v39 = vpop.f32.mrb[0].mxu0 }
 0x150   : > { %v442_v41 = vadd.f32 %v441_v39, %v267_v37  ;;  %v443_v42 = vpop.f32.mrb[1].mxu0 }
 0x151   : > { %v444_v43 = vadd.f32 %v443_v42, %v271_v38  ;;  %v445_v44 = vpop.f32.mrb[2].mxu0  ;;  %v703_v47 = vpop.f32.mrb[0].mxu1 }
 0x152   : > { %509 = vst [vmem:[%s1171_s9] sm:$0xff] %v442_v41  ;;  %v446_v45 = vadd.f32 %v445_v44, %v267_v37  ;;  %v447_v46 = vpop.f32.mrb[3].mxu0  ;;  %v503_v49 = vadd.f32 %v703_v47, %v275_v40  ;;  %v494_v50 = vpop.f32.mrb[1].mxu1 }
 0x153   : > { %510 = vst [vmem:[%s1171_s9 + $0x8] sm:$0xff] %v444_v43  ;;  %v448_v48 = vadd.f32 %v447_v46, %v271_v38  ;;  %v495_v51 = vadd.f32 %v494_v50, %v275_v40  ;;  %v704_v52 = vpop.f32.mrb[2].mxu1 }
 0x154   : > { %512 = vst [vmem:[%s1171_s9 + $0x18] sm:$0xff] %v446_v45  ;;  %517 = vst [vmem:[%s1171_s9 + $0x40] sm:$0xff] %v503_v49  ;;  %v506_v53 = vadd.f32 %v704_v52, %v275_v40  ;;  %v497_v54 = vpop.f32.mrb[3].mxu1 }
 0x155   : > { %513 = vst [vmem:[%s1171_s9 + $0x20] sm:$0xff] %v448_v48  ;;  %511 = vst [vmem:[%s1171_s9 + $0x10] sm:$0xff] %v495_v51  ;;  %v498_v55 = vadd.f32 %v497_v54, %v275_v40 }
 0x156   : > { %520 = vst [vmem:[%s1171_s9 + $0x58] sm:$0xff] %v506_v53 }
 0x157   : > { %v451_v56 = vpop.f32.mrb[4].mxu0  ;;  %514 = vst [vmem:[%s1171_s9 + $0x28] sm:$0xff] %v498_v55 }
 0x158   : > { %v452_v57 = vadd.f32 %v451_v56, %v267_v37  ;;  %v453_v58 = vpop.f32.mrb[5].mxu0 }
 0x159   : > { %v454_v59 = vadd.f32 %v453_v58, %v271_v38  ;;  %v455_v60 = vpop.f32.mrb[6].mxu0 }
 0x15a   : > { %515 = vst [vmem:[%s1171_s9 + $0x30] sm:$0xff] %v452_v57  ;;  %v456_v61 = vadd.f32 %v455_v60, %v267_v37  ;;  %v457_v62 = vpop.f32.mrb[7].mxu0 }
 0x15b   : > { %516 = vst [vmem:[%s1171_s9 + $0x38] sm:$0xff] %v454_v59  ;;  %v458_v63 = vadd.f32 %v457_v62, %v271_v38 }
 0x15c   : > { %518 = vst [vmem:[%s1171_s9 + $0x48] sm:$0xff] %v456_v61 }
 0x15d   : > { %519 = vst [vmem:[%s1171_s9 + $0x50] sm:$0xff] %v458_v63 }
 0x15e   : > { %890 = shalt.err (!%p887_p5)
}
 0x15f   : > { %s891_s29 = scalar_lea.hbm %s1187_s7, 1536  ;;  %s895_s20 = scalar_lea.hbm %s1244_s3, 3072 }
 0x160   : > { %p892_p9 = scmp.ne.s32.totalorder %s1187_s7, %s891_s29  ;;  %p896_p3 = scmp.lt.u32.totalorder %s1187_s7, %s1244_s3 }
 0x161   : > { %p897_p7 = scmp.lt.u32.totalorder %s895_s20, %s891_s29  ;;  %p899_p4 = scmp.lt.u32.totalorder %s891_s29, %s1187_s7 }
 0x162   : > { %p893_p1 = pnand %p892_p9, %p1091_p10 }
 0x163   : > { %p898_p13 = por %p897_p7, %p896_p3 }
 0x164   : > { %p894_p2 = pneg %p893_p1 }
 0x165   : > { %p900_p6 = por %p899_p4, %p898_p13 }
 0x167   : > { %p901_p8 = pnand %p900_p6, %p894_p2 }
 0x169   : > { %904 = shalt.err (!%p901_p8)
}
 0x16a   : > { %s973_s9 = smov 384   ;;  %s974_s10 = smov 24  }
 0x16b   : > { %713 = dma.vmem_to_hbm [thread:$0]  (%p1091_p10), %s1189_s11, 1536, %s1187_s7, %s522_s15, %s973_s9, %s973_s9, %s974_s10  }
 0x16c PF: > { %s553_s18 = sand.u32 1, %s943_s12   ;;  %p1262_p12 = scmp.ne.s32.totalorder %s1252_s23, 0 }
 0x16d   : > { %p1263_p11 = scmp.ge.s32.totalorder %s963_s17, 2  ;;  %s554_s26 = scalar_lea.sflag [#allocation4], %s553_s18 }
 0x16f   : > { %p724_p0 = pnand %p1263_p11, %p1262_p12 }
 0x171   : > { %938 = dma.done.wait (!%p724_p0), %s554_s26, 1536  }
 0x172   : > { %940 = vsyncadd (!%p724_p0), %s554_s26, 4294965760  ;;  %s20_s17 = sadd.s32 1, %s963_s17   ;;  %s1264_s12 = smov %s947_s13 }
 0x173   : > { %p17_p5 = scmp.ge.s32.totalorder %s20_s17, 4   ;;  %s1265_s13 = smov %s951_s14 }
 0x174   : > { %s1266_s14 = smov %s1100_s5  ;;  %s1267_s15 = smov %s959_s16 }
 0x175   : > { %s1268_s16 = smov %s1270_s28  ;;  %19 = sbr.rel (!%p17_p5) target bundleno = 7 (0x7), region = 81 }
 0x17c   :  { %559 = vsyncpa [#allocation3], 1 }
 0x17d   :  { %561 = vsyncpa [#allocation3 + $0x1], 1 }
 0x17e   :  { %562 = vsyncpa [#allocation6], 1 }
 0x17f   :  { %563 = vsyncpa [#allocation4], 1 }
 0x180   :  { %565 = vsyncpa [#allocation4 + $0x1], 1 }

</bundles_post_ra>
